<compile_context>
chip_gen: v6e
topology: v6e:2x2x1
jax: 0.10.0
libtpu: 0.0.40
codegen_flags: <defaults>
</compile_context>

<pallas_src>
import functools

import jax
import jax.numpy as jnp
from jax.experimental import pallas as pl
from jax.experimental.pallas import tpu as pltpu

LANE = 128      # lane width: final output padded to this for a dense store
SUBLANE = 8     # sublane width: batch rows padded to this for an unmasked store


def _vmem():
    return pl.BlockSpec(memory_space=pltpu.MemorySpace.VMEM)


# ---------------------------------------------------------------------------
# Fused kernel: conv+BN+ReLU -> flatten -> fc1 -> stacked LSTM cell -> linear
# ---------------------------------------------------------------------------
def fused_net_kernel(*refs, num_layers):
    (patches_ref, wconv_ref, cshift_ref, eexp_ref, mask_ref, sel_ref,
     w1_ref, b1_ref) = refs[:8]
    lstm_refs = refs[8:8 + 2 * num_layers]
    wlin_ref, blin_ref, o_ref = refs[8 + 2 * num_layers:]

    # --- conv1 (Conv2d + folded eval-BatchNorm + ReLU): ONE im2col matmul ---
    # Dropout2d(p=0.25) is identity in eval mode.
    # TODO(synk): train-mode dropout (stochastic masks) intentionally omitted.
    conv = jnp.dot(patches_ref[...], wconv_ref[...],
                   preferred_element_type=jnp.float32)        # (B*28, 20)
    conv = jnp.maximum(conv + cshift_ref[...], 0.0)           # BN shift + ReLU

    # --- flatten (B*28, 20) -> (B_pad, 560) on the MXU ----------------------
    # E copies channel column c into lane block [c*28, (c+1)*28); M keeps only
    # the lane whose w matches the row's w; Sel sums the 28 rows of each batch
    # element (exactly one nonzero survives per column) and pads batch to 8.
    expanded = jnp.dot(conv, eexp_ref[...],
                       preferred_element_type=jnp.float32)    # (B*28, 560)
    flat = jnp.dot(sel_ref[...], expanded * mask_ref[...],
                   preferred_element_type=jnp.float32)        # (B_pad, 560)

    # --- fc1: ONE (B_pad, 560)@(560, 150) matmul ----------------------------
    h = jnp.dot(flat.astype(w1_ref.dtype), w1_ref[...],
                preferred_element_type=jnp.float32) + b1_ref[...]

    # --- stacked LSTM, seq_len = 1, h0 = c0 = 0 -----------------------------
    # The module builds h0 = c0 = 0 inside forward() and feeds a length-1
    # sequence, so h0@Whh^T, the forget gate and f*c0 vanish exactly.
    # Inter-layer LSTM dropout (p=0.25) is identity in eval mode.
    for layer in range(num_layers):
        wih_ref = lstm_refs[2 * layer]
        bl_ref = lstm_refs[2 * layer + 1]
        hd = wih_ref.shape[1] // 4
        gates = jnp.dot(h.astype(wih_ref.dtype), wih_ref[...],
                        preferred_element_type=jnp.float32) + bl_ref[...]
        sig = jax.nn.sigmoid(gates)           # one full-vreg EUP chain
        tnh = jnp.tanh(gates)                 # one full-vreg EUP chain
        i_g = sig[:, 0 * hd:1 * hd]           # input gate
        g_g = tnh[:, 2 * hd:3 * hd]           # cell candidate
        o_g = sig[:, 3 * hd:4 * hd]           # output gate
        c_t = i_g * g_g
        h = o_g * jnp.tanh(c_t)

    # --- final linear: unmasked lane-dense (B_pad, 128) store ---------------
    o_ref[...] = (jnp.dot(h.astype(wlin_ref.dtype), wlin_ref[...],
                          preferred_element_type=jnp.float32) + blin_ref[...])


# ---------------------------------------------------------------------------
# Parameters: PyTorch-layout init + one-time packing into kernel layouts.
# ---------------------------------------------------------------------------
def init_params(key, input_dim, hidden_dim, layer_dim, output_dim):
    ks = iter(jax.random.split(key, 12 + 4 * layer_dim))

    def rnd(shape, s=0.05):
        return (s * jax.random.normal(next(ks), shape)).astype(jnp.float32)

    p = {}
    p["conv_w"] = rnd((20, 1, 124, 5))
    p["conv_b"] = rnd((20,))
    p["bn_gamma"] = 1.0 + rnd((20,))
    p["bn_beta"] = rnd((20,))
    p["bn_mean"] = rnd((20,))
    p["bn_var"] = 1.0 + jnp.abs(rnd((20,)))
    p["fc1_w"] = rnd((150, 560))
    p["fc1_b"] = rnd((150,))
    p["lstm_wih"], p["lstm_whh"], p["lstm_bih"], p["lstm_bhh"] = [], [], [], []
    for layer in range(layer_dim):
        d_in = input_dim if layer == 0 else hidden_dim
        p["lstm_wih"].append(rnd((4 * hidden_dim, d_in)))
        p["lstm_whh"].append(rnd((4 * hidden_dim, hidden_dim)))  # unused: h0=0
        p["lstm_bih"].append(rnd((4 * hidden_dim,)))
        p["lstm_bhh"].append(rnd((4 * hidden_dim,)))
    p["lin_w"] = rnd((output_dim, hidden_dim))
    p["lin_b"] = rnd((output_dim,))
    return p


def pack_params(p, hidden_dim, layer_dim, output_dim):
    """One-time layout transforms: BN folded into the conv weight, bf16
    weights, torch-flatten-compatible fc1 layout, lane-padded final linear."""
    c_out, _, kh, kw = p["conv_w"].shape
    f1, flat_dim = p["fc1_w"].shape
    w_out = flat_dim // c_out
    eps = 1e-5
    scale = p["bn_gamma"] / jnp.sqrt(p["bn_var"] + eps)           # (20,)

    # (C_out, 1, KH, KW) -> (KH*KW, C_out), BN scale folded into the weight.
    wconv = (p["conv_w"][:, 0].reshape(c_out, kh * kw) * scale[:, None]).T
    # 0/1 expansion: channel c -> lane block [c*w_out, (c+1)*w_out).
    j = jnp.arange(c_out * w_out)
    eexp = (j[None, :] // w_out ==
            jnp.arange(c_out)[:, None]).astype(jnp.float32)

    wlin = jnp.zeros((hidden_dim, LANE), jnp.float32)
    wlin = wlin.at[:, :output_dim].set(p["lin_w"].T)
    blin = jnp.zeros((1, LANE), jnp.float32)
    blin = blin.at[0, :output_dim].set(p["lin_b"])

    packed = {
        "wconvT": wconv.astype(jnp.bfloat16),                     # (620, 20)
        "cshift": (scale * (p["conv_b"] - p["bn_mean"])
                   + p["bn_beta"]).reshape(1, c_out),             # (1, 20)
        "eexp": eexp,                                             # (20, 560)
        # fc1: (150, 560) -> (560, 150); torch flatten order is c*w_out + w.
        "w1": p["fc1_w"].T.astype(jnp.bfloat16),
        "b1": p["fc1_b"].reshape(1, f1),
        "lstm": [],
        "wlin": wlin.astype(jnp.bfloat16),                        # (32, 128)
        "blin": blin,                                             # (1, 128)
    }
    for layer in range(layer_dim):
        packed["lstm"].append(
            jnp.transpose(p["lstm_wih"][layer]).astype(jnp.bfloat16))
        packed["lstm"].append(
            (p["lstm_bih"][layer] + p["lstm_bhh"][layer])
            .reshape(1, 4 * hidden_dim))
    return packed


# ---------------------------------------------------------------------------
# Forward pass wrapper: single fused pallas_call.
# ---------------------------------------------------------------------------
def net_forward(x, packed, hidden_dim, layer_dim, output_dim):
    B, C_in, H_in, W_in = x.shape
    k_hk, c_out = packed["wconvT"].shape
    kw_taps = k_hk // H_in
    w_out = packed["eexp"].shape[1] // c_out
    f1 = packed["w1"].shape[1]
    assert C_in == 1 and W_in - kw_taps + 1 == w_out
    B_pad = max(SUBLANE, ((B + SUBLANE - 1) // SUBLANE) * SUBLANE)

    # im2col slab (B*w_out, H_in*kw_taps), built by XLA (~70 KB bf16).
    x2 = x.reshape(B, H_in, W_in).astype(jnp.bfloat16)
    pat = jnp.stack([x2[:, :, k:k + w_out] for k in range(kw_taps)], axis=2)
    patches = pat.transpose(0, 3, 1, 2).reshape(B * w_out, H_in * kw_taps)

    # 0/1 helpers for the in-kernel flatten (row b*w_out+w, column c*w_out+w).
    r = jnp.arange(B * w_out)
    j = jnp.arange(c_out * w_out)
    mask = (j[None, :] % w_out == (r % w_out)[:, None]).astype(jnp.float32)
    sel = ((r // w_out)[None, :] ==
           jnp.arange(B_pad)[:, None]).astype(jnp.float32)

    lstm_args = list(packed["lstm"])
    inputs = (patches, packed["wconvT"], packed["cshift"], packed["eexp"],
              mask, sel, packed["w1"], packed["b1"], *lstm_args,
              packed["wlin"], packed["blin"])

    # advisory cost hint so XLA can schedule around the tiny custom call
    flops = 2 * (B * w_out * k_hk * c_out
                 + B * w_out * c_out * (c_out * w_out)
                 + B_pad * B * w_out * (c_out * w_out)
                 + B_pad * c_out * w_out * f1
                 + B_pad * f1 * 4 * hidden_dim
                 + (layer_dim - 1) * B_pad * hidden_dim * 4 * hidden_dim
                 + B_pad * hidden_dim * LANE)
    transcendentals = B_pad * layer_dim * 9 * hidden_dim
    bytes_accessed = int(sum(a.size * a.dtype.itemsize for a in inputs)
                         + B_pad * LANE * 4)

    kernel = functools.partial(fused_net_kernel, num_layers=layer_dim)

    out_pad = pl.pallas_call(
        kernel,
        out_shape=jax.ShapeDtypeStruct((B_pad, LANE), jnp.float32),
        in_specs=[_vmem() for _ in inputs],
        out_specs=_vmem(),
        cost_estimate=pl.CostEstimate(flops=flops,
                                      transcendentals=transcendentals,
                                      bytes_accessed=bytes_accessed),
    )(*inputs)

    return out_pad[:B, :output_dim]          # strip sublane/lane padding


if __name__ == "__main__":
    input_dim, hidden_dim, layer_dim, output_dim = 150, 32, 2, 10
    key = jax.random.PRNGKey(0)
    k_x, k_p = jax.random.split(key)

    x = jax.random.normal(k_x, (2, 1, 124, 32), jnp.float32)
    params = init_params(k_p, input_dim, hidden_dim, layer_dim, output_dim)
    packed = pack_params(params, hidden_dim, layer_dim, output_dim)

    fwd = jax.jit(functools.partial(net_forward, hidden_dim=hidden_dim,
                                    layer_dim=layer_dim,
                                    output_dim=output_dim))
    out = jax.block_until_ready(fwd(x, packed))
    assert out.shape == (2, output_dim) and out.dtype == jnp.float32
    assert bool(jnp.all(jnp.isfinite(out)))
    print("KERNEL_OK")
</pallas_src>

<mosaic_0001>
module attributes {stable_mosaic.version = 11 : i64} {
  func.func @fused_net_kernel(%arg0: memref<56x620xbf16, #tpu.memory_space<vmem>>, %arg1: memref<620x20xbf16, #tpu.memory_space<vmem>>, %arg2: memref<1x20xf32, #tpu.memory_space<vmem>>, %arg3: memref<20x560xf32, #tpu.memory_space<vmem>>, %arg4: memref<56x560xf32, #tpu.memory_space<vmem>>, %arg5: memref<8x56xf32, #tpu.memory_space<vmem>>, %arg6: memref<560x150xbf16, #tpu.memory_space<vmem>>, %arg7: memref<1x150xf32, #tpu.memory_space<vmem>>, %arg8: memref<150x128xbf16, #tpu.memory_space<vmem>>, %arg9: memref<1x128xf32, #tpu.memory_space<vmem>>, %arg10: memref<32x128xbf16, #tpu.memory_space<vmem>>, %arg11: memref<1x128xf32, #tpu.memory_space<vmem>>, %arg12: memref<32x128xbf16, #tpu.memory_space<vmem>>, %arg13: memref<1x128xf32, #tpu.memory_space<vmem>>, %arg14: memref<8x128xf32, #tpu.memory_space<vmem>>) attributes {dimension_semantics = [], scalar_prefetch = 0 : i64, scratch_operands = 0 : i64, tpu.core_type = #tpu.core_type<tc>} {
    %c0 = arith.constant 0 : index
    %c0_0 = arith.constant 0 : index
    %0 = vector.load %arg0[%c0, %c0_0] : memref<56x620xbf16, #tpu.memory_space<vmem>>, vector<56x620xbf16>
    %c0_1 = arith.constant 0 : index
    %c0_2 = arith.constant 0 : index
    %1 = vector.load %arg1[%c0_1, %c0_2] : memref<620x20xbf16, #tpu.memory_space<vmem>>, vector<620x20xbf16>
    %cst = arith.constant dense<0.000000e+00> : vector<56x20xf32>
    %2 = tpu.matmul %0, %1, %cst {dimension_numbers = #tpu.dot_dimension_numbers<[1], [0], [0], [1], [0, 0, 1, 1], [], []>} : vector<56x620xbf16>, vector<620x20xbf16>, vector<56x20xf32> -> vector<56x20xf32>
    %c0_3 = arith.constant 0 : index
    %c0_4 = arith.constant 0 : index
    %3 = vector.load %arg2[%c0_3, %c0_4] : memref<1x20xf32, #tpu.memory_space<vmem>>, vector<1x20xf32>
    %4 = vector.broadcast %3 : vector<1x20xf32> to vector<56x20xf32>
    %5 = arith.addf %2, %4 : vector<56x20xf32>
    %cst_5 = arith.constant 0.000000e+00 : f32
    %6 = vector.broadcast %cst_5 : f32 to vector<56x20xf32>
    %7 = arith.maximumf %5, %6 : vector<56x20xf32>
    %c0_6 = arith.constant 0 : index
    %c0_7 = arith.constant 0 : index
    %8 = vector.load %arg3[%c0_6, %c0_7] : memref<20x560xf32, #tpu.memory_space<vmem>>, vector<20x560xf32>
    %cst_8 = arith.constant dense<0.000000e+00> : vector<56x560xf32>
    %9 = tpu.matmul %7, %8, %cst_8 {dimension_numbers = #tpu.dot_dimension_numbers<[1], [0], [0], [1], [0, 0, 1, 1], [], []>} : vector<56x20xf32>, vector<20x560xf32>, vector<56x560xf32> -> vector<56x560xf32>
    %c0_9 = arith.constant 0 : index
    %c0_10 = arith.constant 0 : index
    %10 = vector.load %arg5[%c0_9, %c0_10] : memref<8x56xf32, #tpu.memory_space<vmem>>, vector<8x56xf32>
    %c0_11 = arith.constant 0 : index
    %c0_12 = arith.constant 0 : index
    %11 = vector.load %arg4[%c0_11, %c0_12] : memref<56x560xf32, #tpu.memory_space<vmem>>, vector<56x560xf32>
    %12 = arith.mulf %9, %11 : vector<56x560xf32>
    %cst_13 = arith.constant dense<0.000000e+00> : vector<8x560xf32>
    %13 = tpu.matmul %10, %12, %cst_13 {dimension_numbers = #tpu.dot_dimension_numbers<[1], [0], [0], [1], [0, 0, 1, 1], [], []>} : vector<8x56xf32>, vector<56x560xf32>, vector<8x560xf32> -> vector<8x560xf32>
    %14 = arith.truncf %13 : vector<8x560xf32> to vector<8x560xbf16>
    %c0_14 = arith.constant 0 : index
    %c0_15 = arith.constant 0 : index
    %15 = vector.load %arg6[%c0_14, %c0_15] : memref<560x150xbf16, #tpu.memory_space<vmem>>, vector<560x150xbf16>
    %cst_16 = arith.constant dense<0.000000e+00> : vector<8x150xf32>
    %16 = tpu.matmul %14, %15, %cst_16 {dimension_numbers = #tpu.dot_dimension_numbers<[1], [0], [0], [1], [0, 0, 1, 1], [], []>} : vector<8x560xbf16>, vector<560x150xbf16>, vector<8x150xf32> -> vector<8x150xf32>
    %c0_17 = arith.constant 0 : index
    %c0_18 = arith.constant 0 : index
    %17 = vector.load %arg7[%c0_17, %c0_18] : memref<1x150xf32, #tpu.memory_space<vmem>>, vector<1x150xf32>
    %18 = vector.broadcast %17 : vector<1x150xf32> to vector<8x150xf32>
    %19 = arith.addf %16, %18 : vector<8x150xf32>
    %20 = arith.truncf %19 : vector<8x150xf32> to vector<8x150xbf16>
    %c0_19 = arith.constant 0 : index
    %c0_20 = arith.constant 0 : index
    %21 = vector.load %arg8[%c0_19, %c0_20] : memref<150x128xbf16, #tpu.memory_space<vmem>>, vector<150x128xbf16>
    %cst_21 = arith.constant dense<0.000000e+00> : vector<8x128xf32>
    %22 = tpu.matmul %20, %21, %cst_21 {dimension_numbers = #tpu.dot_dimension_numbers<[1], [0], [0], [1], [0, 0, 1, 1], [], []>} : vector<8x150xbf16>, vector<150x128xbf16>, vector<8x128xf32> -> vector<8x128xf32>
    %c0_22 = arith.constant 0 : index
    %c0_23 = arith.constant 0 : index
    %23 = vector.load %arg9[%c0_22, %c0_23] : memref<1x128xf32, #tpu.memory_space<vmem>>, vector<1x128xf32>
    %24 = vector.broadcast %23 : vector<1x128xf32> to vector<8x128xf32>
    %25 = arith.addf %22, %24 : vector<8x128xf32>
    %26 = arith.negf %25 : vector<8x128xf32>
    %27 = math.exp %26 : vector<8x128xf32>
    %cst_24 = arith.constant 1.000000e+00 : f32
    %28 = vector.broadcast %cst_24 : f32 to vector<8x128xf32>
    %29 = arith.addf %28, %27 : vector<8x128xf32>
    %30 = arith.divf %28, %29 : vector<8x128xf32>
    %31 = math.tanh %25 : vector<8x128xf32>
    %32 = vector.extract_strided_slice %30 {offsets = [0, 0], sizes = [8, 32], strides = [1, 1]} : vector<8x128xf32> to vector<8x32xf32>
    %33 = vector.extract_strided_slice %31 {offsets = [0, 64], sizes = [8, 32], strides = [1, 1]} : vector<8x128xf32> to vector<8x32xf32>
    %34 = vector.extract_strided_slice %30 {offsets = [0, 96], sizes = [8, 32], strides = [1, 1]} : vector<8x128xf32> to vector<8x32xf32>
    %35 = arith.mulf %32, %33 : vector<8x32xf32>
    %36 = math.tanh %35 : vector<8x32xf32>
    %37 = arith.mulf %34, %36 : vector<8x32xf32>
    %38 = arith.truncf %37 : vector<8x32xf32> to vector<8x32xbf16>
    %c0_25 = arith.constant 0 : index
    %c0_26 = arith.constant 0 : index
    %39 = vector.load %arg10[%c0_25, %c0_26] : memref<32x128xbf16, #tpu.memory_space<vmem>>, vector<32x128xbf16>
    %cst_27 = arith.constant dense<0.000000e+00> : vector<8x128xf32>
    %40 = tpu.matmul %38, %39, %cst_27 {dimension_numbers = #tpu.dot_dimension_numbers<[1], [0], [0], [1], [0, 0, 1, 1], [], []>} : vector<8x32xbf16>, vector<32x128xbf16>, vector<8x128xf32> -> vector<8x128xf32>
    %c0_28 = arith.constant 0 : index
    %c0_29 = arith.constant 0 : index
    %41 = vector.load %arg11[%c0_28, %c0_29] : memref<1x128xf32, #tpu.memory_space<vmem>>, vector<1x128xf32>
    %42 = vector.broadcast %41 : vector<1x128xf32> to vector<8x128xf32>
    %43 = arith.addf %40, %42 : vector<8x128xf32>
    %44 = arith.negf %43 : vector<8x128xf32>
    %45 = math.exp %44 : vector<8x128xf32>
    %cst_30 = arith.constant 1.000000e+00 : f32
    %46 = vector.broadcast %cst_30 : f32 to vector<8x128xf32>
    %47 = arith.addf %46, %45 : vector<8x128xf32>
    %48 = arith.divf %46, %47 : vector<8x128xf32>
    %49 = math.tanh %43 : vector<8x128xf32>
    %50 = vector.extract_strided_slice %48 {offsets = [0, 0], sizes = [8, 32], strides = [1, 1]} : vector<8x128xf32> to vector<8x32xf32>
    %51 = vector.extract_strided_slice %49 {offsets = [0, 64], sizes = [8, 32], strides = [1, 1]} : vector<8x128xf32> to vector<8x32xf32>
    %52 = vector.extract_strided_slice %48 {offsets = [0, 96], sizes = [8, 32], strides = [1, 1]} : vector<8x128xf32> to vector<8x32xf32>
    %53 = arith.mulf %50, %51 : vector<8x32xf32>
    %54 = math.tanh %53 : vector<8x32xf32>
    %55 = arith.mulf %52, %54 : vector<8x32xf32>
    %56 = arith.truncf %55 : vector<8x32xf32> to vector<8x32xbf16>
    %c0_31 = arith.constant 0 : index
    %c0_32 = arith.constant 0 : index
    %57 = vector.load %arg12[%c0_31, %c0_32] : memref<32x128xbf16, #tpu.memory_space<vmem>>, vector<32x128xbf16>
    %cst_33 = arith.constant dense<0.000000e+00> : vector<8x128xf32>
    %58 = tpu.matmul %56, %57, %cst_33 {dimension_numbers = #tpu.dot_dimension_numbers<[1], [0], [0], [1], [0, 0, 1, 1], [], []>} : vector<8x32xbf16>, vector<32x128xbf16>, vector<8x128xf32> -> vector<8x128xf32>
    %c0_34 = arith.constant 0 : index
    %c0_35 = arith.constant 0 : index
    %59 = vector.load %arg13[%c0_34, %c0_35] : memref<1x128xf32, #tpu.memory_space<vmem>>, vector<1x128xf32>
    %60 = vector.broadcast %59 : vector<1x128xf32> to vector<8x128xf32>
    %61 = arith.addf %58, %60 : vector<8x128xf32>
    %c0_36 = arith.constant 0 : index
    %c0_37 = arith.constant 0 : index
    %62 = vector.load %arg14[%c0_36, %c0_37] : memref<8x128xf32, #tpu.memory_space<vmem>>, vector<8x128xf32>
    tpu.vector_store %arg14[%c0_36, %c0_37], %61 {strides = array<i32>} : memref<8x128xf32, #tpu.memory_space<vmem>>, vector<8x128xf32>,
    return
  }
}

</mosaic_0001>

<bundles_post_ra>
// kernel: net_forward.1
= control target key start
LH: loop header
LB: loop body
LE: loop exit
PB: predicated region body
PF: predicated region fallthrough
CT: control target
= control target key end

     0   :  { %vm492_vm0 = vcmask 1045504   ;;  %vm479_vm1 = vcmask 883712   ;;  %vm732_vm2 = vcmask 1043456   ;;  %vm710_vm3 = vcmask 162816   ;;  %s2836_s24 = smov 64   ;;  %s3677_s1 = inlined_call_operand.vmem [shape: bf16[620,20], index: 1, kind: input, shape index: {}]   ;;  %s3678_s0 = inlined_call_operand.vmem [shape: bf16[56,620], index: 0, kind: input, shape index: {}]   ;;  %s3679_s3 = inlined_call_operand.vmem [shape: f32[20,560], index: 3, kind: input, shape index: {}]   ;;  %s3680_s2 = inlined_call_operand.vmem [shape: f32[1,20], index: 2, kind: input, shape index: {}]   ;;  %s3681_s6 = inlined_call_operand.vmem [shape: bf16[560,150], index: 6, kind: input, shape index: {}]   ;;  %s3682_s4 = inlined_call_operand.vmem [shape: f32[56,560], index: 4, kind: input, shape index: {}]   ;;  %s3683_s5 = inlined_call_operand.vmem [shape: f32[8,56], index: 5, kind: input, shape index: {}]   ;;  %s3684_s8 = inlined_call_operand.vmem [shape: bf16[150,128], index: 8, kind: input, shape index: {}]   ;;  %s3685_s7 = inlined_call_operand.vmem [shape: f32[1,150], index: 7, kind: input, shape index: {}]   ;;  %s3686_s9 = inlined_call_operand.vmem [shape: f32[1,128], index: 9, kind: input, shape index: {}]   ;;  %s3687_s10 = inlined_call_operand.vmem [shape: bf16[32,128], index: 10, kind: input, shape index: {}]   ;;  %s3688_s11 = inlined_call_operand.vmem [shape: f32[1,128], index: 11, kind: input, shape index: {}]   ;;  %s3689_s12 = inlined_call_operand.vmem [shape: bf16[32,128], index: 12, kind: input, shape index: {}]   ;;  %s3690_s13 = inlined_call_operand.vmem [shape: f32[1,128], index: 13, kind: input, shape index: {}]   ;;  %s3691_s14 = inlined_call_operand.vmem [shape: f32[8,128], index: 14, kind: output, shape index: {}]  }
   0x1   :  { %v2633_v0 = vld [vmem:[%s3677_s1 + $0x78] sm:$0xff]   ;;  %v2637_v4 = vld [vmem:[%s3677_s1 + $0x70] sm:$0xff]   ;;  %v2641_v8 = vld [vmem:[%s3677_s1 + $0x68] sm:$0xff]   ;;  %vm2834_vm4 = vmmov 0   ;;  %vm1133_vm5 = vcmask 457728   ;;  %vm1786_vm6 = vcmask 392192  }
   0x2   :  { %v2634_v1 = vld [vmem:[%s3677_s1 + $0xf8] sm:$0xff]   ;;  %2414 = vmatprep.subr.bf16.mxu0 %v2633_v0  ;;  %v2638_v5 = vld [vmem:[%s3677_s1 + $0xf0] sm:$0xff]   ;;  %v2642_v9 = vld [vmem:[%s3677_s1 + $0xe8] sm:$0xff]   ;;  %vm2002_vm7 = vcmask 1042432   ;;  %vm1998_vm8 = vcmask 179200   ;;  %vm2091_vm9 = vcmask 261120  }
   0x3   :  { %v2635_v2 = vld [vmem:[%s3677_s1 + $0x38] sm:$0xff]   ;;  %2454 = vmatprep.subr.bf16.mxu1 %v2634_v1  ;;  %v2639_v6 = vld [vmem:[%s3677_s1 + $0x30] sm:$0xff]   ;;  %v2643_v10 = vld [vmem:[%s3677_s1 + $0x28] sm:$0xff]  }
   0x4   :  { %v2636_v3 = vld [vmem:[%s3677_s1 + $0xb8] sm:$0xff]   ;;  %2415 = vmatpush3.bf16.msra.mxu0 %v2635_v2  ;;  %v2640_v7 = vld [vmem:[%s3677_s1 + $0xb0] sm:$0xff]   ;;  %v2644_v11 = vld [vmem:[%s3677_s1 + $0xa8] sm:$0xff]  }
   0x5   :  { %2455 = vmatpush3.bf16.msra.mxu1 %v2636_v3  ;;  %2416 = vmatprep.subr.bf16.mxu0 %v2637_v4  ;;  %v2645_v12 = vld [vmem:[%s3677_s1 + $0x60] sm:$0xff]   ;;  %v2649_v16 = vld [vmem:[%s3677_s1 + $0x58] sm:$0xff]   ;;  %v2653_v20 = vld [vmem:[%s3677_s1 + $0x50] sm:$0xff]  }
   0x6   :  { %2456 = vmatprep.subr.bf16.mxu1 %v2638_v5  ;;  %v2646_v13 = vld [vmem:[%s3677_s1 + $0xe0] sm:$0xff]   ;;  %v2650_v17 = vld [vmem:[%s3677_s1 + $0xd8] sm:$0xff]   ;;  %v2654_v21 = vld [vmem:[%s3677_s1 + $0xd0] sm:$0xff]  }
   0x7   :  { %v2647_v14 = vld [vmem:[%s3677_s1 + $0x20] sm:$0xff]   ;;  %v2651_v18 = vld [vmem:[%s3677_s1 + $0x18] sm:$0xff]   ;;  %v2655_v22 = vld [vmem:[%s3677_s1 + $0x10] sm:$0xff]  }
   0x8   :  { %2417 = vmatpush3.bf16.msra.mxu0 %v2639_v6  ;;  %v2648_v15 = vld [vmem:[%s3677_s1 + $0xa0] sm:$0xff]   ;;  %v2652_v19 = vld [vmem:[%s3677_s1 + $0x98] sm:$0xff]   ;;  %v2656_v23 = vld [vmem:[%s3677_s1 + $0x90] sm:$0xff]  }
   0x9   :  { %2457 = vmatpush3.bf16.msra.mxu1 %v2640_v7  ;;  %2418 = vmatprep.subr.bf16.mxu0 %v2641_v8  ;;  %v2657_v24 = vld [vmem:[%s3677_s1 + $0x48] sm:$0xff]   ;;  %v2661_v28 = vld [vmem:[%s3677_s1 + $0x40] sm:$0xff]   ;;  %v2671_v36 = vld [vmem:[%s3677_s1 + $0x130] sm:$0x3f]  }
   0xa   :  { %2458 = vmatprep.subr.bf16.mxu1 %v2642_v9  ;;  %v2658_v25 = vld [vmem:[%s3677_s1 + $0xc8] sm:$0xff]   ;;  %v2662_v29 = vld [vmem:[%s3677_s1 + $0xc0] sm:$0xff]   ;;  %v494_v38 = vsel %vm492_vm0, %v2671_v36, 0  ;;  %v2682_v45 = vld [vmem:[%s3678_s0 + $0x5c] ss:$20 sps:$4 sm:$0xff]  }
   0xb   :  { %v2659_v26 = vld [vmem:[%s3677_s1 + $0x8] sm:$0xff]   ;;  %v2663_v30 = vld [vmem:[%s3677_s1] sm:$0xff]   ;;  %v2686_v46 = vld [vmem:[%s3677_s1 + $0x118] sm:$0xff]  }
   0xc   :  { %2419 = vmatpush3.bf16.msra.mxu0 %v2643_v10  ;;  %v2660_v27 = vld [vmem:[%s3677_s1 + $0x88] sm:$0xff]   ;;  %v2664_v31 = vld [vmem:[%s3677_s1 + $0x80] sm:$0xff]   ;;  %v2687_v47 = vld [vmem:[%s3677_s1 + $0x110] sm:$0xff]   ;;  %v2833_v10 = vmov 0.0  }
   0xd   :  { %2459 = vmatpush3.bf16.msra.mxu1 %v2644_v11  ;;  %2420 = vmatprep.subr.bf16.mxu0 %v2645_v12  ;;  %v2665_v32 = vld [vmem:[%s3678_s0] ss:$20 sps:$4 sm:$0xff]   ;;  %v2667_v33 = vld [vmem:[%s3678_s0 + $0x4] ss:$20 sps:$4 sm:$0xff]   ;;  %v2668_v34 = vld [vmem:[%s3678_s0 + $0x8] ss:$20 sps:$4 sm:$0xff]  }
   0xe   :  { %2460 = vmatprep.subr.bf16.mxu1 %v2646_v13  ;;  %v2670_v35 = vld [vmem:[%s3678_s0 + $0xc] ss:$20 sps:$4 sm:$0xff]   ;;  %528 = vmatprep.mubr.bf16.mxu0 %v2667_v33  ;;  %v2674_v39 = vld [vmem:[%s3678_s0 + $0x34] ss:$20 sps:$4 sm:$0xff]   ;;  %v2677_v41 = vld [vmem:[%s3678_s0 + $0x30] ss:$20 sps:$4 sm:$0xff]  }
   0xf   :  { %592 = vmatprep.mubr.bf16.mxu1 %v2670_v35  ;;  %v2672_v37 = vld [vmem:[%s3678_s0 + $0x2c] ss:$20 sps:$4 sm:$0xff]   ;;  %v2676_v40 = vld [vmem:[%s3678_s0 + $0x28] ss:$20 sps:$4 sm:$0xff]   ;;  %v2684_v50 = vld [vmem:[%s3678_s0 + $0x50] ss:$20 sps:$4 sm:$0xff]  }
  0x10   :  { %2421 = vmatpush3.bf16.msra.mxu0 %v2647_v14  ;;  %v2678_v42 = vld [vmem:[%s3677_s1 + $0x128] sm:$0xff]   ;;  %v2679_v43 = vld [vmem:[%s3677_s1 + $0x120] sm:$0xff]   ;;  %v66_v48 = vld [vmem:[%s3678_s0 + $0x78] sm:$0xff] }
  0x11   :  { %2461 = vmatpush3.bf16.msra.mxu1 %v2648_v15  ;;  %2422 = vmatprep.subr.bf16.mxu0 %v2649_v16  ;;  %v2680_v44 = vld [vmem:[%s3678_s0 + $0x54] ss:$20 sps:$4 sm:$0xff]   ;;  %v67_v49 = vld [vmem:[%s3678_s0 + $0x80] sm:$0xff]  ;;  %v2685_v51 = vld [vmem:[%s3678_s0 + $0x58] ss:$20 sps:$4 sm:$0xff]   ;;  %v2245_v52 = vcombine.high %v66_v48, %v66_v48  ;;  %v2244_v56 = vcombine.low %v66_v48, %v66_v48 }
  0x12   :  { %2462 = vmatprep.subr.bf16.mxu1 %v2650_v17  ;;  %v2247_v53 = vcombine.high %v67_v49, %v67_v49  ;;  %v2692_v54 = vld [vmem:[%s3677_s1 + $0x108] sm:$0xff]   ;;  %v2693_v55 = vld [vmem:[%s3677_s1 + $0x100] sm:$0xff]   ;;  %v2246_v57 = vcombine.low %v67_v49, %v67_v49  ;;  %v706_v62 = vld [vmem:[%s3679_s3 + $0x58] sm:$0xf]  ;;  %s2838_s1 = smov 32  }
  0x13   :  { %v2694_v58 = vld [vmem:[%s3678_s0 + $0x10] ss:$20 sps:$4 sm:$0xff]   ;;  %v2695_v59 = vld [vmem:[%s3678_s0 + $0x60] ss:$20 sps:$4 sm:$0xff]   ;;  %v2696_v60 = vld [vmem:[%s3678_s0 + $0x38] ss:$20 sps:$4 sm:$0xff]  }
  0x14   :  { %2423 = vmatpush3.bf16.msra.mxu0 %v2651_v18  ;;  %v2697_v61 = vld [vmem:[%s3678_s0 + $0x88] ss:$0 sps:$4 sm:$0xff]   ;;  %v705_v0 = vld [vmem:[%s3679_s3 + $0x50] sm:$0xf]  ;;  %v707_v1 = vld [vmem:[%s3679_s3 + $0x60] sm:$0xf] }
  0x15   :  { %2463 = vmatpush3.bf16.msra.mxu1 %v2652_v19  ;;  %2424 = vmatprep.subr.bf16.mxu0 %v2653_v20  ;;  %v708_v63 = vld [vmem:[%s3679_s3 + $0x68] sm:$0xf]  ;;  %v701_v2 = vld [vmem:[%s3679_s3 + $0x30] sm:$0xff]  ;;  %v703_v3 = vld [vmem:[%s3679_s3 + $0x40] sm:$0xff] }
  0x16   :  { %2464 = vmatprep.subr.bf16.mxu1 %v2654_v21  ;;  %v700_v4 = vld [vmem:[%s3679_s3 + $0x28] sm:$0xff]  ;;  %v702_v5 = vld [vmem:[%s3679_s3 + $0x38] sm:$0xff]  ;;  %v695_v8 = vld [vmem:[%s3679_s3] sm:$0xff] }
  0x17   :  { %v696_v6 = vld [vmem:[%s3679_s3 + $0x8] sm:$0xff]  ;;  %v698_v7 = vld [vmem:[%s3679_s3 + $0x18] sm:$0xff]  ;;  %v697_v9 = vld [vmem:[%s3679_s3 + $0x10] sm:$0xff] }
  0x18   :  { %2425 = vmatpush3.bf16.msra.mxu0 %v2655_v22 }
  0x19   :  { %2465 = vmatpush3.bf16.msra.mxu1 %v2656_v23  ;;  %2426 = vmatprep.subr.bf16.mxu0 %v2657_v24 }
  0x1a   :  { %2466 = vmatprep.subr.bf16.mxu1 %v2658_v25 }
  0x1c   :  { %2427 = vmatpush3.bf16.msra.mxu0 %v2659_v26 }
  0x1d   :  { %2467 = vmatpush3.bf16.msra.mxu1 %v2660_v27  ;;  %2428 = vmatprep.subr.bf16.mxu0 %v2661_v28 }
  0x1e   :  { %2468 = vmatprep.subr.bf16.mxu1 %v2662_v29 }
  0x20   :  { %2429 = vmatpush3.bf16.msra.mxu0 %v2663_v30 }
  0x21   :  { %2469 = vmatpush3.bf16.msra.mxu1 %v2664_v31  ;;  %2625 = vmatprep.subr.msk.bf16.mxu0 %vm492_vm0, %v2671_v36 }
  0x22   :  { %2626 = vmatprep.subr.msk.bf16.mxu1 %vm492_vm0, %v2671_v36 }
  0x23   :  { %529 = vmatmul.mubr.bf16.vlgmr.msra.gmra.mxu0 %v2665_v32 }
  0x24   :  { %593 = vmatmul.mubr.bf16.vlgmr.msra.gmra.mxu1 %v2668_v34  ;;  %2530 = vmatpush3.bf16.msra.mxu0 %v494_v38 }
  0x25   :  { %2618 = vmatpush3.bf16.msra.mxu1 %v494_v38  ;;  %536 = vmatprep.mubr.bf16.mxu0 %v2672_v37  ;;  %v3135_v38 = vld [vmem:[%s3680_s2] ss:$0 sm:$0xff] }
  0x26   :  { %600 = vmatprep.mubr.bf16.mxu1 %v2674_v39  ;;  %2531 = vmatprep.subr.bf16.mxu0 %v2678_v42 }
  0x27   :  { %2612 = vmatprep.subr.bf16.mxu1 %v2678_v42 }
  0x28   :  { %2532 = vmatpush3.bf16.msra.mxu0 %v2678_v42 }
  0x29   :  { %2619 = vmatpush3.bf16.msra.mxu1 %v2678_v42  ;;  %2533 = vmatprep.subr.bf16.mxu0 %v2679_v43 }
  0x2a   :  { %2613 = vmatprep.subr.bf16.mxu1 %v2679_v43 }
  0x2b   :  { %537 = vmatmul.mubr.bf16.gmra.mxu0 %v2676_v40 }
  0x2c   :  { %601 = vmatmul.mubr.bf16.gmra.mxu1 %v2677_v41  ;;  %544 = vmatprep.mubr.bf16.mxu0 %v2680_v44 }
  0x2d   :  { %2534 = vmatpush3.bf16.msra.mxu0 %v2679_v43  ;;  %608 = vmatprep.mubr.bf16.mxu1 %v2682_v45 }
  0x2e   :  { %2620 = vmatpush3.bf16.msra.mxu1 %v2679_v43  ;;  %2535 = vmatprep.subr.bf16.mxu0 %v2686_v46 }
  0x2f   :  { %2614 = vmatprep.subr.bf16.mxu1 %v2686_v46 }
  0x31   :  { %2536 = vmatpush3.bf16.msra.mxu0 %v2686_v46 }
  0x32   :  { %2621 = vmatpush3.bf16.msra.mxu1 %v2686_v46  ;;  %2537 = vmatprep.subr.bf16.mxu0 %v2687_v47 }
  0x33   :  { %545 = vmatmul.mubr.bf16.gmra.mxu0 %v2684_v50  ;;  %2615 = vmatprep.subr.bf16.mxu1 %v2687_v47 }
  0x34   :  { %609 = vmatmul.mubr.bf16.gmra.mxu1 %v2685_v51  ;;  %552 = vmatprep.mubr.bf16.mxu0 %v2245_v52 }
  0x35   :  { %2538 = vmatpush3.bf16.msra.mxu0 %v2687_v47  ;;  %616 = vmatprep.mubr.bf16.mxu1 %v2247_v53 }
  0x36   :  { %2622 = vmatpush3.bf16.msra.mxu1 %v2687_v47  ;;  %2539 = vmatprep.subr.bf16.mxu0 %v2692_v54 }
  0x37   :  { %2616 = vmatprep.subr.bf16.mxu1 %v2692_v54 }
  0x39   :  { %2540 = vmatpush3.bf16.msra.mxu0 %v2692_v54 }
  0x3a   :  { %2623 = vmatpush3.bf16.msra.mxu1 %v2692_v54  ;;  %2541 = vmatprep.subr.bf16.mxu0 %v2693_v55 }
  0x3b   :  { %553 = vmatmul.mubr.bf16.gmra.mxu0 %v2244_v56  ;;  %2617 = vmatprep.subr.bf16.mxu1 %v2693_v55 }
  0x3c   :  { %617 = vmatmul.mubr.bf16.gmra.mxu1 %v2246_v57  ;;  %2543 = vmatprep.mubr.msk.bf16.mxu0 %vm479_vm1, %v2694_v58 }
  0x3d   :  { %2542 = vmatpush3.bf16.msra.mxu0 %v2693_v55  ;;  %2547 = vmatprep.mubr.msk.bf16.mxu1 %vm479_vm1, %v2695_v59 }
  0x3e   :  { %2624 = vmatpush3.bf16.msra.mxu1 %v2693_v55  ;;  %2301 = vmatprep.subr.msk.mxu0 %vm732_vm2, %v708_v63 }
  0x3f   :  { %2292 = vmatprep.subr.msk.mxu1 %vm732_vm2, %v706_v62 }
  0x43   :  { %2544 = vmatmul.mubr.msk.bf16.vlgmr.msra.gmra.mxu0 %vm479_vm1, %v2696_v60 }
  0x44   :  { %2548 = vmatmul.mubr.msk.bf16.vlgmr.msra.gmra.mxu1 %vm479_vm1, %v2697_v61  ;;  %2302 = vmatpush1.msk.msra.mxu0 %vm732_vm2, %v707_v1 }
  0x45   :  { %2293 = vmatpush1.msk.msra.mxu1 %vm732_vm2, %v705_v0  ;;  %883 = vmatprep.subr.mxu0 %v703_v3  ;;  %v709_v3 = vld [vmem:[%s3679_s3 + $0x70] sm:$0xf] }
  0x46   :  { %776 = vmatprep.subr.mxu1 %v701_v2  ;;  %884 = vmatpush1.msra.mxu0 %v702_v5 }
  0x47   :  { %777 = vmatpush1.msra.mxu1 %v700_v4  ;;  %885 = vmatprep.subr.mxu0 %v698_v7 }
  0x48   :  { %778 = vmatprep.subr.mxu1 %v696_v6  ;;  %812 = vmatprep.mubr.f32.mxu1 %v2833_v10 }
  0x49   :  { %779 = vmatpush1.msra.mxu1 %v695_v8  ;;  %886 = vmatpush1.msra.mxu0 %v697_v9 }
  0x4a   :  { %919 = vmatprep.mubr.f32.mxu0 %v2833_v10  ;;  %2551 = vmatprep.subr.mxu1 %v2833_v10 }
  0xe3   :  { %v2430_v11 = vpop.f32.mrf.mxu0 }
  0xe4   :  { %v2470_v12 = vpop.f32.mrf.mxu1 }
  0xe5   :  { %v2431_v13 = vpop.f32.mrf.mxu0 }
  0xe6   :  { %v2471_v14 = vpop.f32.mrf.mxu1  ;;  %v2432_v36 = vadd.f32 %v2431_v13, %v2430_v11  ;;  %v704_v11 = vld [vmem:[%s3679_s3 + $0x48] sm:$0xff] }
  0xe7   :  { %v2433_v15 = vpop.f32.mrf.mxu0  ;;  %v2472_v43 = vadd.f32 %v2471_v14, %v2470_v12 }
  0xe8   :  { %v2473_v16 = vpop.f32.mrf.mxu1  ;;  %v531_v42 = vadd.f32 %v2432_v36, %v3135_v38 }
  0xe9   :  { %v2434_v17 = vpop.f32.mrf.mxu0 }
  0xea   :  { %v2474_v18 = vpop.f32.mrf.mxu1  ;;  %v2435_v44 = vadd.f32 %v2434_v17, %v2433_v15  ;;  %v595_v53 = vadd.f32 %v2472_v43, %v531_v42 }
  0xeb   :  { %v2436_v19 = vpop.f32.mrf.mxu0  ;;  %v2475_v51 = vadd.f32 %v2474_v18, %v2473_v16  ;;  %v699_v18 = vld [vmem:[%s3679_s3 + $0x20] sm:$0xff] }
  0xec   :  { %v2476_v20 = vpop.f32.mrf.mxu1  ;;  %v534_v50 = vadd.f32 %v2435_v44, %v3135_v38 }
  0xed   :  { %v2437_v21 = vpop.f32.mrf.mxu0 }
  0xee   :  { %v2477_v22 = vpop.f32.mrf.mxu1  ;;  %v2438_v47 = vadd.f32 %v2437_v21, %v2436_v19  ;;  %v598_v63 = vadd.f32 %v2475_v51, %v534_v50 }
  0xef   :  { %v2439_v23 = vpop.f32.mrf.mxu0  ;;  %v2478_v57 = vadd.f32 %v2477_v22, %v2476_v20 }
  0xf0   :  { %v2479_v24 = vpop.f32.mrf.mxu1  ;;  %v539_v56 = vadd.f32 %v2438_v47, %v3135_v38 }
  0xf1   :  { %v2440_v25 = vpop.f32.mrf.mxu0 }
  0xf2   :  { %v2480_v26 = vpop.f32.mrf.mxu1  ;;  %v2441_v54 = vadd.f32 %v2440_v25, %v2439_v23  ;;  %v603_v5 = vadd.f32 %v2478_v57, %v539_v56 }
  0xf3   :  { %v2442_v27 = vpop.f32.mrf.mxu0  ;;  %v2481_v1 = vadd.f32 %v2480_v26, %v2479_v24 }
  0xf4   :  { %v2482_v28 = vpop.f32.mrf.mxu1  ;;  %v542_v0 = vadd.f32 %v2441_v54, %v3135_v38 }
  0xf5   :  { %v2443_v29 = vpop.f32.mrf.mxu0 }
  0xf6   :  { %v2483_v30 = vpop.f32.mrf.mxu1  ;;  %v2444_v4 = vadd.f32 %v2443_v29, %v2442_v27  ;;  %v606_v9 = vadd.f32 %v2481_v1, %v542_v0  ;;  %v1089_v0 = vld [vmem:[%s3682_s4 + $0xd0] sm:$0xff]  ;;  %v1091_v1 = vld [vmem:[%s3682_s4 + $0xe0] sm:$0xff] }
  0xf7   :  { %v2445_v31 = vpop.f32.mrf.mxu0  ;;  %v2484_v13 = vadd.f32 %v2483_v30, %v2482_v28 }
  0xf8   :  { %v3128_v32 = vpop.f32.mrf.mxu1  ;;  %v547_v12 = vadd.f32 %v2444_v4, %v3135_v38  ;;  %v1088_v4 = vld [vmem:[%s3682_s4 + $0xc8] sm:$0xff] }
  0xf9   :  { %v2446_v33 = vpop.f32.mrf.mxu0 }
  0xfa   :  { %v2486_v34 = vpop.f32.mrf.mxu1  ;;  %v2447_v14 = vadd.f32 %v2446_v33, %v2445_v31  ;;  %v611_v21 = vadd.f32 %v2484_v13, %v547_v12 }
  0xfb   :  { %v2448_v35 = vpop.f32.mrf.mxu0  ;;  %v2487_v20 = vadd.f32 %v2486_v34, %v3128_v32 }
  0xfc   :  { %v3130_v37 = vpop.f32.mrf.mxu1  ;;  %v550_v19 = vadd.f32 %v2447_v14, %v3135_v38  ;;  %v1083_v14 = vld [vmem:[%s3682_s4 + $0xa0] sm:$0xff] }
  0xfd   :  { %v2449_v39 = vpop.f32.mrf.mxu0 }
  0xfe   :  { %v3137_v40 = vpop.f32.mrf.mxu1  ;;  %v2450_v15 = vadd.f32 %v2449_v39, %v2448_v35  ;;  %v614_v27 = vadd.f32 %v2487_v20, %v550_v19  ;;  %v1081_v19 = vld [vmem:[%s3682_s4 + $0x90] sm:$0xff] }
  0xff   :  { %v2451_v41 = vpop.f32.mrf.mxu0  ;;  %v2490_v23 = vadd.f32 %v3137_v40, %v3130_v37 }
 0x100   :  { %v2491_v45 = vpop.f32.mrf.mxu1  ;;  %v555_v22 = vadd.f32 %v2450_v15, %v3135_v38  ;;  %v1085_v15 = vld [vmem:[%s3682_s4 + $0xb0] sm:$0xff] }
 0x101   :  { %v2452_v46 = vpop.f32.mrf.mxu0 }
 0x102   :  { %v2492_v48 = vpop.f32.mrf.mxu1  ;;  %v619_v28 = vadd.f32 %v2490_v23, %v555_v22  ;;  %v1078_v23 = vld [vmem:[%s3682_s4 + $0x78] sm:$0xff] }
 0x103   :  { %v2545_v49 = vpop.f32.mrf.mxu0 }
 0x104   :  { %v3141_v52 = vpop.f32.mrf.mxu1  ;;  %v667_v7 = vadd.f32 %v2545_v49, %v603_v5  ;;  %v1090_v5 = vld [vmem:[%s3682_s4 + $0xd8] sm:$0xff] }
 0x105   :  { %v658_v55 = vpop.f32.mrf.mxu0  ;;  %v683_v31 = vadd.f32 %v3141_v52, %v619_v28  ;;  %v1076_v28 = vld [vmem:[%s3682_s4 + $0x68] sm:$0xff] }
 0x106   :  { %v659_v58 = vadd.f32 %v658_v55, %v595_v53  ;;  %v674_v59 = vpop.f32.mrf.mxu1  ;;  %v690_v16 = vmax.f32 %v667_v7, 0.0 }
 0x107   :  { %v2546_v60 = vpop.f32.mrf.mxu0  ;;  %v675_v24 = vadd.f32 %v674_v59, %v611_v21  ;;  %v694_v33 = vmax.f32 %v683_v31, 0.0 }
 0x108   :  { %v3144_v61 = vmax.f32 %v659_v58, 0.0  ;;  %v2550_v62 = vpop.f32.mrf.mxu1  ;;  %v670_v17 = vadd.f32 %v2546_v60, %v606_v9  ;;  %v1094_v60 = vld [vmem:[%s3682_s4 + $0xf8] sm:$0xff] }
 0x109   :  { %v661_v2 = vpop.f32.mrf.mxu0  ;;  %v692_v29 = vmax.f32 %v675_v24, 0.0  ;;  %v1093_v62 = vld [vmem:[%s3682_s4 + $0xf0] sm:$0xff]  ;;  %v1086_v9 = vld [vmem:[%s3682_s4 + $0xb8] sm:$0xff]  ;;  %v1080_v24 = vld [vmem:[%s3682_s4 + $0x88] sm:$0xff] }
 0x10a   :  { %v662_v6 = vadd.f32 %v661_v2, %v598_v63  ;;  %2294 = vmatmul.mubr.msk.f32.vlgmr.msra.gmra.mxu1 %vm710_vm3, %v3144_v61  ;;  %2303 = vmatmul.mubr.msk.f32.vlgmr.msra.gmra.mxu0 %vm710_vm3, %v3144_v61  ;;  %v691_v25 = vmax.f32 %v670_v17, 0.0  ;;  %v677_v26 = vpop.f32.mrf.mxu1  ;;  %v1095_v63 = vld [vmem:[%s3682_s4 + $0x100] sm:$0xff] }
 0x10b   :  { %818 = vmatprep.mubr.f32.mxu1 %v2833_v10  ;;  %925 = vmatprep.mubr.f32.mxu0 %v2833_v10  ;;  %v678_v30 = vadd.f32 %v677_v26, %v614_v27  ;;  %v1074_v27 = vld [vmem:[%s3682_s4 + $0x58] sm:$0xff] }
 0x10c   :  { %v689_v8 = vmax.f32 %v662_v6, 0.0  ;;  %2552 = vmatpush3.msk.msra.mxu1 %vm732_vm2, %v709_v3 }
 0x10d   :  { %2553 = vmatprep.subr.mxu1 %v2833_v10  ;;  %v693_v32 = vmax.f32 %v678_v30, 0.0 }
 0x10e   :  { %2295 = vmatmul.mubr.msk.f32.gmra.mxu1 %vm710_vm3, %v689_v8  ;;  %2304 = vmatmul.mubr.msk.f32.gmra.mxu0 %vm710_vm3, %v689_v8 }
 0x10f   :  { %824 = vmatprep.mubr.f32.mxu1 %v2833_v10  ;;  %931 = vmatprep.mubr.f32.mxu0 %v2833_v10 }
 0x110   :  { %2554 = vmatpush3.msra.mxu1 %v704_v11 }
 0x111   :  { %2555 = vmatprep.subr.mxu1 %v2833_v10 }
 0x112   :  { %2296 = vmatmul.mubr.msk.f32.gmra.mxu1 %vm710_vm3, %v690_v16  ;;  %2305 = vmatmul.mubr.msk.f32.gmra.mxu0 %vm710_vm3, %v690_v16 }
 0x113   :  { %830 = vmatprep.mubr.f32.mxu1 %v2833_v10  ;;  %937 = vmatprep.mubr.f32.mxu0 %v2833_v10 }
 0x114   :  { %2556 = vmatpush3.msra.mxu1 %v699_v18  ;;  %v1079_v18 = vld [vmem:[%s3682_s4 + $0x80] sm:$0xff] }
 0x116   :  { %2297 = vmatmul.mubr.msk.f32.gmra.mxu1 %vm710_vm3, %v691_v25  ;;  %2306 = vmatmul.mubr.msk.f32.gmra.mxu0 %vm710_vm3, %v691_v25 }
 0x117   :  { %836 = vmatprep.mubr.f32.mxu1 %v2833_v10  ;;  %943 = vmatprep.mubr.f32.mxu0 %v2833_v10 }
 0x11a   :  { %2298 = vmatmul.mubr.msk.f32.gmra.mxu1 %vm710_vm3, %v692_v29  ;;  %2307 = vmatmul.mubr.msk.f32.gmra.mxu0 %vm710_vm3, %v692_v29 }
 0x11b   :  { %842 = vmatprep.mubr.f32.mxu1 %v2833_v10  ;;  %949 = vmatprep.mubr.f32.mxu0 %v2833_v10 }
 0x11e   :  { %2299 = vmatmul.mubr.msk.f32.gmra.mxu1 %vm710_vm3, %v693_v32  ;;  %2308 = vmatmul.mubr.msk.f32.gmra.mxu0 %vm710_vm3, %v693_v32 }
 0x11f   :  { %848 = vmatprep.mubr.f32.mxu1 %v2833_v10  ;;  %955 = vmatprep.mubr.f32.mxu0 %v2833_v10 }
 0x122   :  { %2300 = vmatmul.mubr.msk.f32.gmra.mxu1 %vm710_vm3, %v694_v33  ;;  %2309 = vmatmul.mubr.msk.f32.gmra.mxu0 %vm710_vm3, %v694_v33 }
 0x123   :  { %2557 = vmatprep.mubr.msk.f32.mxu1 %vm2834_vm4, %v2833_v10  ;;  %1201 = vmatprep.mubr.f32.mxu0 %v2833_v10 }
 0x126   :  { %2558 = vmatmul.mubr.msk.f32.vlgmr.msra.gmra.mxu1 %vm710_vm3, %v3144_v61  ;;  %v1096_v61 = vld [vmem:[%s3682_s4 + $0x108] sm:$0xff] }
 0x127   :  { %2560 = vmatprep.mubr.msk.f32.mxu1 %vm2834_vm4, %v2833_v10 }
 0x12a   :  { %2561 = vmatmul.mubr.msk.f32.gmra.mxu1 %vm710_vm3, %v689_v8  ;;  %v1084_v8 = vld [vmem:[%s3682_s4 + $0xa8] sm:$0xff] }
 0x12b   :  { %2563 = vmatprep.mubr.msk.f32.mxu1 %vm2834_vm4, %v2833_v10 }
 0x12e   :  { %2564 = vmatmul.mubr.msk.f32.gmra.mxu1 %vm710_vm3, %v690_v16 }
 0x12f   :  { %2566 = vmatprep.mubr.msk.f32.mxu1 %vm2834_vm4, %v2833_v10 }
 0x132   :  { %2567 = vmatmul.mubr.msk.f32.gmra.mxu1 %vm710_vm3, %v691_v25 }
 0x133   :  { %2569 = vmatprep.mubr.msk.f32.mxu1 %vm2834_vm4, %v2833_v10 }
 0x136   :  { %2570 = vmatmul.mubr.msk.f32.gmra.mxu1 %vm710_vm3, %v692_v29 }
 0x137   :  { %2572 = vmatprep.mubr.msk.f32.mxu1 %vm2834_vm4, %v2833_v10 }
 0x13a   :  { %2573 = vmatmul.mubr.msk.f32.gmra.mxu1 %vm710_vm3, %v693_v32  ;;  %v1073_v32 = vld [vmem:[%s3682_s4 + $0x50] sm:$0xff] }
 0x13b   :  { %2575 = vmatprep.mubr.msk.f32.mxu1 %vm2834_vm4, %v2833_v10 }
 0x13e   :  { %2576 = vmatmul.mubr.msk.f32.gmra.mxu1 %vm710_vm3, %v694_v33  ;;  %v1075_v33 = vld [vmem:[%s3682_s4 + $0x60] sm:$0xff] }
 0x13f   :  { %1272 = vmatprep.mubr.f32.mxu1 %v2833_v10 }
 0x1ca   :  { %v3218_v34 = vpop.f32.mrf.mxu1  ;;  %v3220_v35 = vpop.f32.mrf.mxu0 }
 0x1cc   :  { %v3222_v36 = vpop.f32.mrf.mxu1  ;;  %v3224_v37 = vpop.f32.mrf.mxu0 }
 0x1ce   :  { %v3226_v38 = vpop.f32.mrf.mxu1  ;;  %v3228_v39 = vpop.f32.mrf.mxu0 }
 0x1d0   :  { %v3230_v40 = vpop.f32.mrf.mxu1  ;;  %v3232_v41 = vpop.f32.mrf.mxu0 }
 0x1d2   :  { %v3234_v42 = vpop.f32.mrf.mxu1  ;;  %v3236_v43 = vpop.f32.mrf.mxu0 }
 0x1d4   :  { %v3238_v44 = vpop.f32.mrf.mxu1  ;;  %v3240_v45 = vpop.f32.mrf.mxu0 }
 0x1d6   :  { %v3242_v46 = vpop.f32.mrf.mxu1  ;;  %v3244_v47 = vpop.f32.mrf.mxu0 }
 0x1d8   :  { %v834_v48 = vpop.f32.mrf.mxu1  ;;  %v941_v49 = vpop.f32.mrf.mxu0 }
 0x1da   :  { %v838_v50 = vpop.f32.mrf.mxu1  ;;  %v945_v51 = vpop.f32.mrf.mxu0 }
 0x1db   :  { %v1118_v29 = vmul.f32 %v1083_v14, %v838_v50  ;;  %v1120_v30 = vmul.f32 %v1085_v15, %v945_v51  ;;  %v1069_v50 = vld [vmem:[%s3682_s4 + $0x30] sm:$0xff]  ;;  %v1071_v51 = vld [vmem:[%s3682_s4 + $0x40] sm:$0xff]  ;;  %v1092_v14 = vld [vmem:[%s3682_s4 + $0xe8] sm:$0xff] }
 0x1dc   :  { %v840_v52 = vpop.f32.mrf.mxu1  ;;  %v947_v53 = vpop.f32.mrf.mxu0 }
 0x1dd   :  { %v1119_v25 = vmul.f32 %v1084_v8, %v840_v52  ;;  %v1121_v26 = vmul.f32 %v1086_v9, %v947_v53  ;;  %v1114_v52 = vmul.f32 %v1079_v18, %v834_v48  ;;  %v1116_v53 = vmul.f32 %v1081_v19, %v941_v49  ;;  %v1068_v48 = vld [vmem:[%s3682_s4 + $0x28] sm:$0xff]  ;;  %v1070_v49 = vld [vmem:[%s3682_s4 + $0x38] sm:$0xff]  ;;  %v1097_v9 = vld [vmem:[%s3682_s4 + $0x110] sm:$0xff] }
 0x1de   :  { %v844_v54 = vpop.f32.mrf.mxu1  ;;  %v951_v55 = vpop.f32.mrf.mxu0  ;;  %v2713_v19 = vld [vmem:[%s3681_s6 + $0x40] ss:$8 sps:$4 sm:$0xff]  }
 0x1df   :  { %v1123_v20 = vmul.f32 %v1088_v4, %v844_v54  ;;  %v1125_v21 = vmul.f32 %v1090_v5, %v951_v55  ;;  %v1113_v54 = vmul.f32 %v1078_v23, %v3242_v46  ;;  %v1115_v55 = vmul.f32 %v1080_v24, %v3244_v47  ;;  %v1064_v46 = vld [vmem:[%s3682_s4 + $0x8] sm:$0xff]  ;;  %v1066_v47 = vld [vmem:[%s3682_s4 + $0x18] sm:$0xff]  ;;  %v1077_v24 = vld [vmem:[%s3682_s4 + $0x70] sm:$0xff] }
 0x1e0   :  { %v846_v56 = vpop.f32.mrf.mxu1  ;;  %v953_v57 = vpop.f32.mrf.mxu0  ;;  %v2701_v5 = vld [vmem:[%s3681_s6 + $0x60] ss:$8 sps:$4 sm:$0xff]  }
 0x1e1   :  { %v1124_v16 = vmul.f32 %v1089_v0, %v846_v56  ;;  %v1126_v17 = vmul.f32 %v1091_v1, %v953_v57  ;;  %v1109_v57 = vmul.f32 %v1074_v27, %v3238_v44  ;;  %v1063_v44 = vld [vmem:[%s3682_s4] sm:$0xff]  ;;  %v1099_v1 = vmul.f32 %v1064_v46, %v3222_v36  ;;  %v2700_v36 = vld [vmem:[%s3681_s6 + $0x74] ss:$8 sps:$4 sm:$0xff]   ;;  %v2743_v46 = vld [vmem:[%s3681_s6 + $0xf0] ss:$8 sps:$4 sm:$0xff]  }
 0x1e2   :  { %v850_v58 = vpop.f32.mrf.mxu1  ;;  %v957_v59 = vpop.f32.mrf.mxu0  ;;  %v2727_v27 = vld [vmem:[%s3681_s6 + $0x24] ss:$8 sps:$4 sm:$0xff]  }
 0x1e3   :  { %v1128_v11 = vmul.f32 %v1093_v62, %v850_v58  ;;  %v1130_v12 = vmul.f32 %v1095_v63, %v957_v59  ;;  %v1111_v58 = vmul.f32 %v1076_v28, %v3240_v45  ;;  %v1108_v59 = vmul.f32 %v1073_v32, %v3234_v42  ;;  %v1065_v45 = vld [vmem:[%s3682_s4 + $0x10] sm:$0xff]  ;;  %v1072_v28 = vld [vmem:[%s3682_s4 + $0x48] sm:$0xff] }
 0x1e4   :  { %v852_v2 = vpop.f32.mrf.mxu1  ;;  %v959_v3 = vpop.f32.mrf.mxu0  ;;  %v1104_v62 = vmul.f32 %v1069_v50, %v3230_v40  ;;  %v1106_v63 = vmul.f32 %v1071_v51, %v3232_v41  ;;  %v1103_v42 = vmul.f32 %v1068_v48, %v3226_v38  ;;  %v1100_v40 = vmul.f32 %v1065_v45, %v3220_v35  ;;  %v3353_v38 = vld [vmem:[%s3683_s5] sm:$0xff]  ;;  %v2704_v51 = vld [vmem:[%s3681_s6 + $0x170] ss:$8 sps:$4 sm:$0xff]   ;;  %s2837_s5 = smov 96  }
 0x1e5   :  { %v1129_v6 = vmul.f32 %v1094_v60, %v852_v2  ;;  %v1131_v7 = vmul.f32 %v1096_v61, %v959_v3  ;;  %v1110_v60 = vmul.f32 %v1075_v33, %v3236_v43  ;;  %v1105_v43 = vmul.f32 %v1070_v49, %v3228_v39  ;;  %v2703_v35 = vld [vmem:[%s3681_s6 + $0x64] ss:$8 sps:$4 sm:$0xff]   ;;  %v2725_v32 = vld [vmem:[%s3681_s6 + $0x20] ss:$8 sps:$4 sm:$0xff]   ;;  %v2745_v49 = vld [vmem:[%s3681_s6 + $0xf4] ss:$8 sps:$4 sm:$0xff]  }
 0x1e6   :  { %v3276_v13 = vpop.f32.mrf.mxu1  ;;  %v1101_v2 = vmul.f32 %v1066_v47, %v3224_v37  ;;  %v1098_v3 = vmul.f32 %v1063_v44, %v3218_v34  ;;  %v2698_v34 = vld [vmem:[%s3681_s6 + $0x70] ss:$8 sps:$4 sm:$0xff]   ;;  %v2737_v48 = vld [vmem:[%s3681_s6] ss:$8 sps:$4 sm:$0xff]   ;;  %v2751_v47 = vld [vmem:[%s3681_s6 + $0xe4] ss:$8 sps:$4 sm:$0xff]  }
 0x1e7   :  { %1155 = vmatprep.subr.mxu0 %v1129_v6  ;;  %1226 = vmatprep.subr.mxu1 %v1131_v7  ;;  %v2709_v6 = vld [vmem:[%s3681_s6 + $0x54] ss:$8 sps:$4 sm:$0xff]   ;;  %v2728_v45 = vld [vmem:[%s3681_s6 + $0x130] ss:$8 sps:$4 sm:$0xff]  }
 0x1e8   :  { %v2559_v22 = vpop.f32.mrf.mxu1  ;;  %1156 = vmatpush1.msra.mxu0 %v1128_v11  ;;  %1227 = vmatpush1.msra.mxu1 %v1130_v12  ;;  %v2707_v11 = vld [vmem:[%s3681_s6 + $0x50] ss:$8 sps:$4 sm:$0xff]   ;;  %v2715_v12 = vld [vmem:[%s3681_s6 + $0x44] ss:$8 sps:$4 sm:$0xff]   ;;  %v2757_v44 = vld [vmem:[%s3681_s6 + $0xd4] ss:$8 sps:$4 sm:$0xff]  }
 0x1e9   :  { %1157 = vmatprep.subr.mxu0 %v1124_v16  ;;  %1228 = vmatprep.subr.mxu1 %v1126_v17  ;;  %v1087_v17 = vld [vmem:[%s3682_s4 + $0xc0] sm:$0xff]  ;;  %v1082_v22 = vld [vmem:[%s3682_s4 + $0x98] sm:$0xff] }
 0x1ea   :  { %v3302_v31 = vpop.f32.mrf.mxu1  ;;  %1158 = vmatpush1.msra.mxu0 %v1123_v20  ;;  %1229 = vmatpush1.msra.mxu1 %v1125_v21  ;;  %v2721_v21 = vld [vmem:[%s3681_s6 + $0x34] ss:$8 sps:$4 sm:$0xff]  }
 0x1eb   :  { %1159 = vmatprep.subr.mxu0 %v1119_v25  ;;  %1230 = vmatprep.subr.mxu1 %v1121_v26  ;;  %v2719_v25 = vld [vmem:[%s3681_s6 + $0x30] ss:$8 sps:$4 sm:$0xff]   ;;  %v1107_v33 = vmul.f32 %v1072_v28, %v3302_v31  ;;  %v2712_v31 = vld [vmem:[%s3681_s6 + $0x164] ss:$8 sps:$4 sm:$0xff]  }
 0x1ec   :  { %v2562_v56 = vpop.f32.mrf.mxu1  ;;  %1160 = vmatpush1.msra.mxu0 %v1118_v29  ;;  %1231 = vmatpush1.msra.mxu1 %v1120_v30  ;;  %v1067_v30 = vld [vmem:[%s3682_s4 + $0x20] sm:$0xff] }
 0x1ed   :  { %1161 = vmatprep.subr.mxu0 %v1114_v52  ;;  %1232 = vmatprep.subr.mxu1 %v1116_v53  ;;  %v2733_v52 = vld [vmem:[%s3681_s6 + $0x14] ss:$8 sps:$4 sm:$0xff]   ;;  %v1102_v50 = vmul.f32 %v1067_v30, %v3276_v13  ;;  %v2739_v13 = vld [vmem:[%s3681_s6 + $0x4] ss:$8 sps:$4 sm:$0xff]  }
 0x1ee   :  { %v3334_v61 = vpop.f32.mrf.mxu1  ;;  %1162 = vmatpush1.msra.mxu0 %v1113_v54  ;;  %1233 = vmatpush1.msra.mxu1 %v1115_v55  ;;  %v2706_v53 = vld [vmem:[%s3681_s6 + $0x174] ss:$8 sps:$4 sm:$0xff]   ;;  %v2731_v54 = vld [vmem:[%s3681_s6 + $0x10] ss:$8 sps:$4 sm:$0xff]   ;;  %v2710_v55 = vld [vmem:[%s3681_s6 + $0x160] ss:$8 sps:$4 sm:$0xff]  }
 0x1ef   :  { %1163 = vmatprep.subr.mxu0 %v1109_v57  ;;  %1234 = vmatprep.subr.mxu1 %v1111_v58  ;;  %v1112_v29 = vmul.f32 %v1077_v24, %v3334_v61  ;;  %v2718_v56 = vld [vmem:[%s3681_s6 + $0x154] ss:$8 sps:$4 sm:$0xff]   ;;  %v2716_v57 = vld [vmem:[%s3681_s6 + $0x150] ss:$8 sps:$4 sm:$0xff]   ;;  %v2724_v58 = vld [vmem:[%s3681_s6 + $0x144] ss:$8 sps:$4 sm:$0xff]  }
 0x1f0   :  { %v2565_v0 = vpop.f32.mrf.mxu1  ;;  %1164 = vmatpush1.msra.mxu0 %v1108_v59  ;;  %1235 = vmatpush1.msra.mxu1 %v1110_v60  ;;  %v2722_v59 = vld [vmem:[%s3681_s6 + $0x140] ss:$8 sps:$4 sm:$0xff]   ;;  %v2730_v60 = vld [vmem:[%s3681_s6 + $0x134] ss:$8 sps:$4 sm:$0xff]   ;;  %v2835_v24 = vmov 0  }
 0x1f1   :  { %1165 = vmatprep.subr.mxu0 %v1104_v62  ;;  %1236 = vmatprep.subr.mxu1 %v1106_v63  ;;  %v2749_v61 = vld [vmem:[%s3681_s6 + $0xe0] ss:$8 sps:$4 sm:$0xff]   ;;  %v2736_v62 = vld [vmem:[%s3681_s6 + $0x124] ss:$8 sps:$4 sm:$0xff]   ;;  %v2755_v63 = vld [vmem:[%s3681_s6 + $0xd0] ss:$8 sps:$4 sm:$0xff]  }
 0x1f2   :  { %v1043_v41 = vpop.f32.mrf.mxu1  ;;  %1166 = vmatpush1.msra.mxu0 %v1103_v42  ;;  %1237 = vmatpush1.msra.mxu1 %v1105_v43  ;;  %v2763_v42 = vld [vmem:[%s3681_s6 + $0xc4] ss:$8 sps:$4 sm:$0xff]   ;;  %v2734_v43 = vld [vmem:[%s3681_s6 + $0x120] ss:$8 sps:$4 sm:$0xff]   ;;  %v2742_v0 = vld [vmem:[%s3681_s6 + $0x114] ss:$8 sps:$4 sm:$0xff]  }
 0x1f3   :  { %1167 = vmatprep.subr.mxu0 %v1099_v1  ;;  %1238 = vmatprep.subr.mxu1 %v1101_v2  ;;  %v1117_v26 = vmul.f32 %v1082_v22, %v1043_v41  ;;  %v2761_v1 = vld [vmem:[%s3681_s6 + $0xc0] ss:$8 sps:$4 sm:$0xff]   ;;  %v2769_v2 = vld [vmem:[%s3681_s6 + $0xb4] ss:$8 sps:$4 sm:$0xff]   ;;  %v2767_v41 = vld [vmem:[%s3681_s6 + $0xb0] ss:$8 sps:$4 sm:$0xff]  }
 0x1f4   :  { %v2568_v37 = vpop.f32.mrf.mxu1  ;;  %1168 = vmatpush1.msra.mxu0 %v1098_v3  ;;  %1239 = vmatpush1.msra.mxu1 %v1100_v40  ;;  %v2740_v3 = vld [vmem:[%s3681_s6 + $0x110] ss:$8 sps:$4 sm:$0xff]   ;;  %v2748_v40 = vld [vmem:[%s3681_s6 + $0x104] ss:$8 sps:$4 sm:$0xff]  }
 0x1f5   :  { %2318 = vmatmul.mubr.msk.f32.vlgmr.msra.gmra.mxu0 %vm1133_vm5, %v3353_v38  ;;  %2578 = vmatprep.subr.mxu0 %v2833_v10  ;;  %v2754_v37 = vld [vmem:[%s3681_s6 + $0x1f4] ss:$8 sps:$4 sm:$0xff]   ;;  %v2793_v22 = vld [vmem:[%s3681_s6 + $0x184] ss:$8 sps:$4 sm:$0xff]  }
 0x1f6   :  { %v1048_v39 = vpop.f32.mrf.mxu1  ;;  %2319 = vmatmul.mubr.msk.f32.vlgmr.msra.gmra.mxu1 %vm1133_vm5, %v3353_v38  ;;  %2592 = vmatprep.mubr.msk.f32.mxu0 %vm2834_vm4, %v2833_v10 }
 0x1f7   :  { %1790 = vmatprep.subr.bf16.mxu1 %v2700_v36  ;;  %v1122_v23 = vmul.f32 %v1087_v17, %v1048_v39  ;;  %v2746_v36 = vld [vmem:[%s3681_s6 + $0x100] ss:$8 sps:$4 sm:$0xff]   ;;  %v2752_v39 = vld [vmem:[%s3681_s6 + $0x1f0] ss:$8 sps:$4 sm:$0xff]   ;;  %v2784_v17 = vld [vmem:[%s3681_s6 + $0x1a4] ss:$8 sps:$4 sm:$0xff]  }
 0x1f8   :  { %v2571_v4 = vpop.f32.mrf.mxu1  ;;  %1791 = vmatpush1.bf16.msra.mxu1 %v2698_v34  ;;  %v2773_v34 = vld [vmem:[%s3681_s6 + $0xa0] ss:$8 sps:$4 sm:$0xff]  }
 0x1f9   :  { %1792 = vmatprep.subr.bf16.mxu1 %v2703_v35  ;;  %v2781_v35 = vld [vmem:[%s3681_s6 + $0x94] ss:$8 sps:$4 sm:$0xff]   ;;  %v2760_v4 = vld [vmem:[%s3681_s6 + $0x1e4] ss:$8 sps:$4 sm:$0xff]  }
 0x1fa   :  { %v1053_v7 = vpop.f32.mrf.mxu1 }
 0x1fb   :  { %v1127_v20 = vmul.f32 %v1092_v14, %v1053_v7  ;;  %v2766_v7 = vld [vmem:[%s3681_s6 + $0x1d4] ss:$8 sps:$4 sm:$0xff]   ;;  %v2785_v14 = vld [vmem:[%s3681_s6 + $0x80] ss:$8 sps:$4 sm:$0xff]  }
 0x1fc   :  { %v2574_v8 = vpop.f32.mrf.mxu1  ;;  %1793 = vmatpush1.bf16.msra.mxu1 %v2701_v5  ;;  %v2779_v5 = vld [vmem:[%s3681_s6 + $0x90] ss:$8 sps:$4 sm:$0xff]  }
 0x1fd   :  { %1794 = vmatprep.subr.bf16.mxu1 %v2709_v6  ;;  %v2758_v6 = vld [vmem:[%s3681_s6 + $0x1e0] ss:$8 sps:$4 sm:$0xff]   ;;  %v2764_v8 = vld [vmem:[%s3681_s6 + $0x1d0] ss:$8 sps:$4 sm:$0xff]  }
 0x1fe   :  { %v1058_v15 = vpop.f32.mrf.mxu1 }
 0x1ff   :  { %v1132_v16 = vmul.f32 %v1097_v9, %v1058_v15  ;;  %v2772_v9 = vld [vmem:[%s3681_s6 + $0x1c4] ss:$8 sps:$4 sm:$0xff]  }
 0x200   :  { %v2577_v18 = vpop.f32.mrf.mxu1  ;;  %1795 = vmatpush1.bf16.msra.mxu1 %v2707_v11  ;;  %v2770_v11 = vld [vmem:[%s3681_s6 + $0x1c0] ss:$8 sps:$4 sm:$0xff]   ;;  %v2787_v15 = vld [vmem:[%s3681_s6 + $0x84] ss:$8 sps:$4 sm:$0xff]  }
 0x201   :  { %2579 = vmatpush3.msra.mxu0 %v1132_v16  ;;  %1796 = vmatprep.subr.bf16.mxu1 %v2715_v12  ;;  %v2778_v12 = vld [vmem:[%s3681_s6 + $0x1b4] ss:$8 sps:$4 sm:$0xff]   ;;  %v2776_v16 = vld [vmem:[%s3681_s6 + $0x1b0] ss:$8 sps:$4 sm:$0xff]   ;;  %v2796_v18 = vld [vmem:[%s3681_s6 + $0x224] ss:$8 sps:$4 sm:$0xff]  }
 0x202   :  { %2580 = vmatprep.subr.mxu0 %v2833_v10 }
 0x203   :  { %2581 = vmatpush3.msra.mxu0 %v1127_v20  ;;  %v2790_v20 = vld [vmem:[%s3681_s6 + $0x194] ss:$8 sps:$4 sm:$0xff]  }
 0x204   :  { %2582 = vmatprep.subr.mxu0 %v2833_v10  ;;  %1797 = vmatpush1.bf16.msra.mxu1 %v2713_v19  ;;  %v2782_v19 = vld [vmem:[%s3681_s6 + $0x1a0] ss:$8 sps:$4 sm:$0xff]  }
 0x205   :  { %2583 = vmatpush3.msra.mxu0 %v1122_v23  ;;  %1798 = vmatprep.subr.bf16.mxu1 %v2721_v21  ;;  %v2788_v21 = vld [vmem:[%s3681_s6 + $0x190] ss:$8 sps:$4 sm:$0xff]   ;;  %v2791_v23 = vld [vmem:[%s3681_s6 + $0x180] ss:$8 sps:$4 sm:$0xff]  }
 0x206   :  { %2584 = vmatprep.subr.mxu0 %v2833_v10 }
 0x207   :  { %2585 = vmatpush3.msra.mxu0 %v1117_v26 }
 0x208   :  { %2586 = vmatprep.subr.mxu0 %v2833_v10  ;;  %1799 = vmatpush1.bf16.msra.mxu1 %v2719_v25 }
 0x209   :  { %2587 = vmatpush3.msra.mxu0 %v1112_v29  ;;  %1800 = vmatprep.subr.bf16.mxu1 %v2727_v27 }
 0x20a   :  { %2588 = vmatprep.subr.mxu0 %v2833_v10 }
 0x20b   :  { %2589 = vmatpush3.msra.mxu0 %v1107_v33  ;;  %v2794_v33 = vld [vmem:[%s3681_s6 + $0x220] ss:$8 sps:$4 sm:$0xff]  }
 0x20c   :  { %2590 = vmatprep.subr.mxu0 %v2833_v10  ;;  %1801 = vmatpush1.bf16.msra.mxu1 %v2725_v32 }
 0x20d   :  { %2591 = vmatpush3.msra.mxu0 %v1102_v50  ;;  %1802 = vmatprep.subr.bf16.mxu1 %v2733_v52  ;;  %v2803_v50 = vld [vmem:[%s3684_s8 + $0x38] sm:$0xff]  }
 0x20e   :  { %2593 = vmatmul.mubr.msk.f32.vlgmr.msra.gmra.mxu0 %vm1133_vm5, %v3353_v38  ;;  %1831 = vmatprep.subr.bf16.mxu0 %v2706_v53  ;;  %v2775_v38 = vld [vmem:[%s3681_s6 + $0xa4] ss:$8 sps:$4 sm:$0xff]   ;;  %v2799_v53 = vld [vmem:[%s3681_s6 + $0x214] ss:$8 sps:$4 sm:$0xff]  }
 0x20f   :  { %1832 = vmatpush1.bf16.msra.mxu0 %v2704_v51  ;;  %v2797_v51 = vld [vmem:[%s3681_s6 + $0x210] ss:$8 sps:$4 sm:$0xff]  }
 0x210   :  { %1833 = vmatprep.subr.bf16.mxu0 %v2712_v31  ;;  %1803 = vmatpush1.bf16.msra.mxu1 %v2731_v54  ;;  %v2802_v31 = vld [vmem:[%s3681_s6 + $0x204] ss:$8 sps:$4 sm:$0xff]   ;;  %v2804_v54 = vld [vmem:[%s3684_s8 + $0x30] sm:$0xff]  }
 0x211   :  { %1804 = vmatprep.subr.bf16.mxu1 %v2739_v13  ;;  %v2800_v13 = vld [vmem:[%s3681_s6 + $0x200] ss:$8 sps:$4 sm:$0xff]  }
 0x213   :  { %1834 = vmatpush1.bf16.msra.mxu0 %v2710_v55  ;;  %v2805_v55 = vld [vmem:[%s3684_s8 + $0x28] sm:$0xff]  }
 0x214   :  { %1835 = vmatprep.subr.bf16.mxu0 %v2718_v56  ;;  %1805 = vmatpush1.bf16.msra.mxu1 %v2737_v48  ;;  %v2806_v56 = vld [vmem:[%s3684_s8 + $0x20] sm:$0xff]  }
 0x215   :  { %1806 = vmatprep.subr.bf16.mxu1 %v2745_v49 }
 0x217   :  { %1836 = vmatpush1.bf16.msra.mxu0 %v2716_v57 }
 0x218   :  { %1837 = vmatprep.subr.bf16.mxu0 %v2724_v58  ;;  %1807 = vmatpush2.bf16.msra.mxu1 %v2743_v46  ;;  %v2807_v58 = vld [vmem:[%s3684_s8 + $0x18] sm:$0xff]   ;;  %v2808_v46 = vld [vmem:[%s3684_s8 + $0x10] sm:$0xff]  }
 0x219   :  { %1808 = vmatprep.subr.bf16.mxu1 %v2751_v47  ;;  %v2809_v47 = vld [vmem:[%s3684_s8 + $0x8] sm:$0xff]  }
 0x21b   :  { %1838 = vmatpush1.bf16.msra.mxu0 %v2722_v59  ;;  %v2810_v59 = vld [vmem:[%s3684_s8] sm:$0xff]  }
 0x21c   :  { %1839 = vmatprep.subr.bf16.mxu0 %v2730_v60  ;;  %1809 = vmatpush2.bf16.msra.mxu1 %v2749_v61  ;;  %v2811_v60 = vld [vmem:[%s3684_s8 + $0x48] ss:$0 sps:$4 sm:$0x77]  }
 0x21d   :  { %1810 = vmatprep.subr.bf16.mxu1 %v2757_v44  ;;  %v2004_v61 = vsel %vm2002_vm7, %v2811_v60, 0  ;;  %v2812_v44 = vld [vmem:[%s3684_s8 + $0x40] sm:$0xff]   ;;  %v2815_v60 = vld [vmem:[%s3689_s12 + $0x8] sm:$0xff]  }
 0x21f   :  { %1840 = vmatpush1.bf16.msra.mxu0 %v2728_v45 }
 0x220   :  { %1841 = vmatprep.subr.bf16.mxu0 %v2736_v62  ;;  %1811 = vmatpush2.bf16.msra.mxu1 %v2755_v63  ;;  %v1426_v63 = vlaneseq }
 0x221   :  { %1812 = vmatprep.subr.bf16.mxu1 %v2763_v42 }
 0x223   :  { %1842 = vmatpush1.bf16.msra.mxu0 %v2734_v43 }
 0x224   :  { %1843 = vmatprep.subr.bf16.mxu0 %v2742_v0  ;;  %1813 = vmatpush2.bf16.msra.mxu1 %v2761_v1 }
 0x225   :  { %1814 = vmatprep.subr.bf16.mxu1 %v2769_v2  ;;  %v1427_v2 = vshrl.u32 %v1426_v63, 7 }
 0x227   :  { %1844 = vmatpush1.bf16.msra.mxu0 %v2740_v3 }
 0x228   :  { %1845 = vmatprep.subr.bf16.mxu0 %v2748_v40  ;;  %1815 = vmatpush2.bf16.msra.mxu1 %v2767_v41  ;;  %v1428_v41 = vsub.s32 0, %v1427_v2 }
 0x229   :  { %1816 = vmatprep.subr.bf16.mxu1 %v2775_v38  ;;  %v1424_v38 = vld [vmem:[%s3685_s7] sm:$0x3] }
 0x22b   :  { %1846 = vmatpush1.bf16.msra.mxu0 %v2746_v36  ;;  %v1432_v36 = vsub.s32 1, %v1427_v2 }
 0x22c   :  { %1847 = vmatprep.subr.bf16.mxu0 %v2754_v37  ;;  %1817 = vmatpush2.bf16.msra.mxu1 %v2773_v34  ;;  %v1429_v37 = vrot.slane %v1424_v38, %v1428_v41 }
 0x22d   :  { %1818 = vmatprep.subr.bf16.mxu1 %v2781_v35  ;;  %v1433_v34 = vrot.slane %v1424_v38, %v1432_v36 }
 0x22f   :  { %1848 = vmatpush2.bf16.msra.mxu0 %v2752_v39 }
 0x230   :  { %1849 = vmatprep.subr.bf16.mxu0 %v2760_v4  ;;  %1819 = vmatpush2.bf16.msra.mxu1 %v2779_v5 }
 0x231   :  { %1820 = vmatprep.subr.bf16.mxu1 %v2787_v15 }
 0x233   :  { %1850 = vmatpush2.bf16.msra.mxu0 %v2758_v6 }
 0x234   :  { %1851 = vmatprep.subr.bf16.mxu0 %v2766_v7  ;;  %1821 = vmatpush2.bf16.msra.mxu1 %v2785_v14 }
 0x235   :  { %1882 = vmatprep.subr.bf16.mxu1 %v2796_v18 }
 0x237   :  { %1852 = vmatpush2.bf16.msra.mxu0 %v2764_v8 }
 0x238   :  { %1853 = vmatprep.subr.bf16.mxu0 %v2772_v9 }
 0x23b   :  { %1854 = vmatpush2.bf16.msra.mxu0 %v2770_v11 }
 0x23c   :  { %1855 = vmatprep.subr.bf16.mxu0 %v2778_v12 }
 0x23f   :  { %1856 = vmatpush2.bf16.msra.mxu0 %v2776_v16  ;;  %v2392_v16 = vld [vmem:[%s3686_s9] ss:$0 sm:$0xff] }
 0x240   :  { %1857 = vmatprep.subr.bf16.mxu0 %v2784_v17 }
 0x243   :  { %1858 = vmatpush2.bf16.msra.mxu0 %v2782_v19 }
 0x244   :  { %1859 = vmatprep.subr.bf16.mxu0 %v2790_v20 }
 0x247   :  { %1860 = vmatpush2.bf16.msra.mxu0 %v2788_v21 }
 0x248   :  { %1861 = vmatprep.subr.bf16.mxu0 %v2793_v22 }
 0x24b   :  { %1862 = vmatpush2.bf16.msra.mxu0 %v2791_v23 }
 0x24c   :  { %2006 = vmatprep.subr.bf16.mxu0 %v2835_v24 }
 0x2b5   :  { %v1203_v25 = vpop.f32.mrf.mxu0 }
 0x2b6   :  { %v1274_v26 = vpop.f32.mrf.mxu1  ;;  %v1349_v27 = vpack.c.bf16 %v1203_v25, %v1203_v25 }
 0x2b7   :  { %v1205_v28 = vpop.f32.mrf.mxu0  ;;  %v1351_v30 = vpack.c.bf16 %v1274_v26, %v1274_v26 }
 0x2b8   :  { %v1350_v29 = vpack.c.bf16 %v1205_v28, %v1205_v28  ;;  %v1276_v32 = vpop.f32.mrf.mxu1 }
 0x2b9   :  { %v1352_v52 = vpack.c.bf16 %v1276_v32, %v1276_v32 }
 0x2ba   :  { %1822 = vmatprep.mubr.bf16.mxu1 %v1350_v29  ;;  %v2813_v29 = vld [vmem:[%s3687_s10 + $0x8] sm:$0xff]  }
 0x2bb   :  { %1823 = vmatmul.mubr.bf16.vlgmr.msra.gmra.mxu1 %v1349_v27  ;;  %1863 = vmatprep.mubr.bf16.mxu0 %v1352_v52 }
 0x2bc   :  { %1883 = vmatpush1.bf16.msra.mxu1 %v2794_v33  ;;  %1864 = vmatmul.mubr.bf16.vlgmr.msra.gmra.mxu0 %v1351_v30  ;;  %v2814_v30 = vld [vmem:[%s3687_s10] sm:$0xff]  }
 0x2bd   :  { %1884 = vmatprep.subr.bf16.mxu1 %v2799_v53  ;;  %1904 = vmatprep.mubr.bf16.mxu1 %v2835_v24 }
 0x2be   :  { %2007 = vmatpush1.bf16.msra.mxu0 %v2803_v50 }
 0x2bf   :  { %2008 = vmatprep.subr.bf16.mxu0 %v2835_v24 }
 0x2c0   :  { %1885 = vmatpush1.bf16.msra.mxu1 %v2797_v51  ;;  %v2405_v51 = vld [vmem:[%s3688_s11] ss:$0 sm:$0xff] }
 0x2c1   :  { %1886 = vmatprep.subr.bf16.mxu1 %v2802_v31 }
 0x2c2   :  { %2009 = vmatpush1.bf16.msra.mxu0 %v2804_v54 }
 0x2c3   :  { %2010 = vmatprep.subr.bf16.mxu0 %v2835_v24 }
 0x2c4   :  { %1887 = vmatpush1.bf16.msra.mxu1 %v2800_v13 }
 0x2c5   :  { %2595 = vmatprep.subr.bf16.mxu1 %v2833_v10 }
 0x2c6   :  { %2011 = vmatpush1.bf16.msra.mxu0 %v2805_v55 }
 0x2c7   :  { %2012 = vmatprep.subr.bf16.mxu0 %v2835_v24 }
 0x2ca   :  { %2013 = vmatpush1.bf16.msra.mxu0 %v2806_v56 }
 0x2cb   :  { %2014 = vmatprep.subr.bf16.mxu0 %v2835_v24 }
 0x2ce   :  { %v1345_v48 = vpop.f32.mrf.mxu0  ;;  %2015 = vmatpush1.bf16.msra.mxu0 %v2807_v58 }
 0x2cf   :  { %v1353_v49 = vpack.c.bf16 %v1345_v48, %v1345_v48  ;;  %2016 = vmatprep.subr.bf16.mxu0 %v2835_v24 }
 0x2d0   :  { %v2594_v57 = vpop.f32.mrf.mxu0 }
 0x2d1   :  { %2391 = vmatmul.mubr.msk.bf16.vlgmr.msra.gmra.mxu1 %vm1786_vm6, %v1353_v49 }
 0x2d2   :  { %2599 = vmatprep.mubr.msk.bf16.mxu1 %vm2834_vm4, %v2833_v10  ;;  %2017 = vmatpush1.bf16.msra.mxu0 %v2808_v46 }
 0x2d3   :  { %2018 = vmatprep.subr.bf16.mxu0 %v2835_v24  ;;  %2596 = vmatpush3.bf16.msra.mxu1 %v2813_v29 }
 0x2d4   :  { %2597 = vmatprep.subr.bf16.mxu1 %v2833_v10 }
 0x2d6   :  { %2019 = vmatpush1.bf16.msra.mxu0 %v2809_v47 }
 0x2d7   :  { %2020 = vmatprep.subr.bf16.mxu0 %v2835_v24  ;;  %2598 = vmatpush3.bf16.msra.mxu1 %v2814_v30 }
 0x2d8   :  { %2603 = vmatprep.subr.bf16.mxu1 %v2833_v10 }
 0x2da   :  { %2021 = vmatpush1.bf16.msra.mxu0 %v2810_v59 }
 0x2db   :  { %2034 = vmatprep.subr.bf16.mxu0 %v2835_v24 }
 0x2de   :  { %2035 = vmatpush2.bf16.msra.mxu0 %v2004_v61  ;;  %v2816_v61 = vld [vmem:[%s3689_s12] sm:$0xff]  }
 0x2df   :  { %2036 = vmatprep.subr.bf16.mxu0 %v2835_v24 }
 0x2e2   :  { %2037 = vmatpush2.bf16.msra.mxu0 %v2812_v44 }
 0x37b   :  { %v1824_v45 = vpop.f32.mrf.mxu1 }
 0x37c   :  { %v1865_v62 = vpop.f32.mrf.mxu0  ;;  %v1825_v35 = vadd.f32 %v1824_v45, %v1429_v37 }
 0x37d   :  { %v1826_v42 = vpop.f32.mrf.mxu1 }
 0x37e   :  { %v1867_v43 = vpop.f32.mrf.mxu0  ;;  %v1827_v39 = vadd.f32 %v1826_v42, %v1433_v34  ;;  %v1866_v4 = vadd.f32 %v1865_v62, %v1825_v35 }
 0x37f   :  { %v1828_v0 = vpop.f32.mrf.mxu1 }
 0x380   :  { %v1869_v1 = vpop.f32.mrf.mxu0  ;;  %v1868_v6 = vadd.f32 %v1867_v43, %v1827_v39  ;;  %v2410_v43 = vld [vmem:[%s3690_s13] ss:$0 sm:$0xff] }
 0x381   :  { %v1829_v3 = vpop.f32.mrf.mxu1 }
 0x382   :  { %v1870_v40 = vpop.f32.mrf.mxu0 }
 0x391   :  { %v1906_v5 = vpop.f32.mrf.mxu1 }
 0x392   :  { %v1907_v7 = vadd.f32 %v1906_v5, %v1866_v4 }
 0x393   :  { %v1908_v8 = vpop.f32.mrf.mxu1 }
 0x394   :  { %v1909_v9 = vadd.f32 %v1908_v8, %v1868_v6  ;;  %v1913_v14 = vpack.c.bf16 %v1907_v7, %v1907_v7 }
 0x395   :  { %v1910_v11 = vpop.f32.mrf.mxu1 }
 0x396   :  { %v1914_v12 = vpack.c.bf16 %v1909_v9, %v1909_v9 }
 0x397   :  { %v1911_v15 = vpop.f32.mrf.mxu1 }
 0x398   :  { %2403 = vmatprep.mubr.msk.bf16.mxu0 %vm1998_vm8, %v1914_v12 }
 0x399   :  { %2039 = vmatmul.mubr.bf16.vlgmr.msra.gmra.mxu0 %v1913_v14 }
 0x459   :  { %v2040_v17 = vpop.f32.mrf.mxu0 }
 0x45a   :  { %v2041_v18 = vadd.f32 %v2392_v16, %v2040_v17 }
 0x45b   :  { %v2042_v19 = vpop.f32.mrf.mxu0 }
 0x45c   :  { %2817 = vtanh.f32 %v2041_v18  ;;  %v2404_v23 = vmul.f32 -1.442695, %v2041_v18 }
 0x45d   :  { %v2043_v20 = vpop.f32.mrf.mxu0 }
 0x45e   :  { %2819 = vpow2.f32 %v2404_v23 }
 0x45f   :  { %v2044_v21 = vpop.f32.mrf.mxu0 }
 0x469   :  { %v2818_v22 = vpop.eup %2817 }
 0x46a   :  { %2054 = vrot.lane.b32.xlu0 %v2818_v22, %s2836_s24 }
 0x46b   :  { %v2820_v24 = vpop.eup %2819 }
 0x46c   :  { %v2049_v25 = vadd.f32 1.0, %v2820_v24 }
 0x46e   :  { %2821 = vrcp.f32 %v2049_v25 }
 0x47b   :  { %v2822_v26 = vpop.eup %2821 }
 0x4dc   :  { %v2055_v27 = vpop.permute.xlu0 %2054 }
 0x4dd   :  { %v2057_v28 = vmul.f32 %v2822_v26, %v2055_v27 }
 0x4df   :  { %2823 = vtanh.f32 %v2057_v28 }
 0x4ec   :  { %v2824_v32 = vpop.eup %2823 }
 0x4ed   :  { %2060 = vrot.lane.b32.xlu0 %v2824_v32, %s2837_s5 }
 0x55f   :  { %v2061_v33 = vpop.permute.xlu0 %2060 }
 0x560   :  { %v2063_v52 = vmul.f32 %v2822_v26, %v2061_v33 }
 0x562   :  { %v2064_v53 = vpack.c.bf16 %v2063_v52, %v2063_v52 }
 0x564   :  { %2077 = vrot.lane.b32.xlu1 %v2064_v53, %s2838_s1 }
 0x5d6   :  { %v2078_v50 = vpop.permute.xlu1 %2077 }
 0x5d7   :  { %2600 = vmatmul.mubr.msk.bf16.vlgmr.msra.gmra.mxu1 %vm2091_vm9, %v2078_v50 }
 0x5d8   :  { %2607 = vmatprep.mubr.msk.bf16.mxu1 %vm2834_vm4, %v2833_v10  ;;  %2604 = vmatpush3.bf16.msra.mxu1 %v2815_v60 }
 0x5d9   :  { %2605 = vmatprep.subr.bf16.mxu1 %v2833_v10 }
 0x5dc   :  { %2606 = vmatpush3.bf16.msra.mxu1 %v2816_v61 }
 0x697   :  { %v2129_v31 = vpop.f32.mrf.mxu1 }
 0x698   :  { %v2130_v54 = vadd.f32 %v2405_v51, %v2129_v31 }
 0x699   :  { %v2601_v13 = vpop.f32.mrf.mxu1 }
 0x69a   :  { %2825 = vtanh.f32 %v2130_v54  ;;  %v2409_v49 = vmul.f32 -1.442695, %v2130_v54 }
 0x69b   :  { %v2132_v55 = vpop.f32.mrf.mxu1 }
 0x69c   :  { %2827 = vpow2.f32 %v2409_v49 }
 0x69d   :  { %v2602_v56 = vpop.f32.mrf.mxu1 }
 0x6a7   :  { %v2826_v48 = vpop.eup %2825 }
 0x6a8   :  { %2143 = vrot.lane.b32.xlu1 %v2826_v48, %s2836_s24 }
 0x6a9   :  { %v2828_v57 = vpop.eup %2827 }
 0x6aa   :  { %v2138_v58 = vadd.f32 1.0, %v2828_v57 }
 0x6ac   :  { %2829 = vrcp.f32 %v2138_v58 }
 0x6b9   :  { %v2830_v46 = vpop.eup %2829 }
 0x71a   :  { %v2144_v47 = vpop.permute.xlu1 %2143 }
 0x71b   :  { %v2146_v59 = vmul.f32 %v2830_v46, %v2144_v47 }
 0x71d   :  { %2831 = vtanh.f32 %v2146_v59 }
 0x72a   :  { %v2832_v44 = vpop.eup %2831 }
 0x72b   :  { %2149 = vrot.lane.b32.xlu0 %v2832_v44, %s2837_s5 }
 0x79d   :  { %v2150_v45 = vpop.permute.xlu0 %2149 }
 0x79e   :  { %v2152_v62 = vmul.f32 %v2830_v46, %v2150_v45 }
 0x7a0   :  { %v2153_v63 = vpack.c.bf16 %v2152_v62, %v2152_v62 }
 0x7a2   :  { %2166 = vrot.lane.b32.xlu1 %v2153_v63, %s2838_s1 }
 0x814   :  { %v2167_v42 = vpop.permute.xlu1 %2166 }
 0x815   :  { %2608 = vmatmul.mubr.msk.bf16.vlgmr.msra.gmra.mxu1 %vm2091_vm9, %v2167_v42 }
 0x8d5   :  { %v2217_v0 = vpop.f32.mrf.mxu1 }
 0x8d6   :  { %v2218_v1 = vadd.f32 %v2410_v43, %v2217_v0 }
 0x8d7   :  { %v2609_v2 = vpop.f32.mrf.mxu1 }
 0x8d8   :  { %2223 = vst [vmem:[%s3691_s14] sm:$0xff] %v2218_v1 }
 0x8d9   :  { %v2220_v10 = vpop.f32.mrf.mxu1 }
 0x8db   :  { %v2610_v3 = vpop.f32.mrf.mxu1 }

</bundles_post_ra>
